<compile_context>
chip_gen: v5e
topology: v5e:2x2
jax: 0.10.0
libtpu: 0.0.40
codegen_flags: <defaults>
</compile_context>

<pallas_src>
import jax
import jax.numpy as jnp
from jax import lax
from jax.experimental import pallas as pl
from jax.experimental.pallas import tpu as pltpu

BN_EPS = 1e-5
TILE_M = 512           # M-tile rows; with bf16 patches this stays well inside the
                       # v7x 32 MiB scoped VMEM (incl. 2x double-buffering) and is
                       # comfortably sized for v5e/v6e.
LANES = 128


def _round_up(x, m):
    return (x + m - 1) // m * m


def _cparams(n_axes):
    return pltpu.CompilerParams(
        dimension_semantics=("parallel",) * n_axes,   # megacore-friendly on v7x
        vmem_limit_bytes=64 * 1024 * 1024)


# ------------------------------ Pallas kernels ------------------------------

def _mm_stats_kernel(p_ref, w_ref, y_ref, s_ref):
    """BN block, pass 1: y = patches @ W (bf16 in, f32 accumulation) plus
    per-tile per-channel sum / sum-of-squares for the cross-tile BN reduction.
    The conv bias is intentionally omitted: it cancels under train-mode BN.
    Zero-padded rows contribute exactly zero to both partial sums."""
    acc = jnp.dot(p_ref[...], w_ref[...], preferred_element_type=jnp.float32)
    y_ref[...] = acc
    s = jnp.sum(acc, axis=0, keepdims=True)            # (1, Coutp)
    ss = jnp.sum(acc * acc, axis=0, keepdims=True)     # (1, Coutp)
    s_ref[...] = jnp.concatenate([s, ss], axis=0)[None]   # (1, 2, Coutp)


def _scale_shift_relu_kernel(y_ref, sc_ref, sh_ref, o_ref):
    """BN block, pass 2: out = relu(y * scale + shift)  (scale/shift fold in
    mean, rsqrt(var+eps), gamma, beta computed outside)."""
    o_ref[...] = jnp.maximum(y_ref[...] * sc_ref[...] + sh_ref[...], 0.0)


def _mm_bias_tanh_kernel(p_ref, w_ref, b_ref, o_ref):
    """Output layer: tanh(patches @ W + b), bf16 MXU inputs, f32 accumulation."""
    acc = jnp.dot(p_ref[...], w_ref[...], preferred_element_type=jnp.float32)
    o_ref[...] = jnp.tanh(acc + b_ref[...])


# --------------------------- JAX glue per layer -----------------------------

def _phase_patches(x):
    """x: (N,H,W,Cin) f32 -> bf16 patches (4, N*H*W, 4*Cin) for a stride-2,
    K=4, pad=1 transposed conv decomposed into 4 sub-pixel (phase) convs.
    Only the 4 non-zero taps per phase are kept (no dilation zeros)."""
    # TODO(synk): the tap windows are still materialized in HBM (~4x activation
    # bytes); a (kh,kw) reduction grid axis / manual DMA would remove that too.
    N, H, W, Cin = x.shape
    xp = jnp.pad(x, ((0, 0), (1, 1), (1, 1), (0, 0)))
    phases = []
    for ph in range(2):
        for pw in range(2):
            taps = [xp[:, ph + a:ph + a + H, pw + b:pw + b + W, :]
                    for a in range(2) for b in range(2)]
            phases.append(jnp.concatenate(taps, axis=-1))        # (N,H,W,4*Cin)
    patches = jnp.stack(phases, axis=0).reshape(4, N * H * W, 4 * Cin)
    return patches.astype(jnp.bfloat16)


def _phase_weights(w, coutp):
    """w: PyTorch (Cin, Cout, 4, 4) -> bf16 (4, 4*Cin, coutp), Cout zero-padded
    to a multiple of 128 lanes."""
    Cout = w.shape[1]
    mats = []
    for ph in range(2):
        for pw in range(2):
            taps = [w[:, :, 3 - (ph + 2 * a), 3 - (pw + 2 * b)]
                    for a in range(2) for b in range(2)]          # each (Cin, Cout)
            mats.append(jnp.concatenate(taps, axis=0))            # (4*Cin, Cout)
    wm = jnp.stack(mats, axis=0)                                  # (4, 4*Cin, Cout)
    wm = jnp.pad(wm, ((0, 0), (0, 0), (0, coutp - Cout)))
    return wm.astype(jnp.bfloat16)


def _deconv_block_s2(x, w, b, gamma, beta, apply_bn):
    """Stride-2, K=4, pad=1 ConvTranspose2d (+ train-mode BN + ReLU, or + Tanh)
    as tiled Pallas matmuls over the 4 sub-pixel phases."""
    N, H, W, Cin = x.shape
    Cout = w.shape[1]
    coutp = _round_up(Cout, LANES)
    kdim = 4 * Cin
    M = N * H * W                                   # rows per phase
    tile_m = min(TILE_M, _round_up(M, 8))
    m_pad = _round_up(M, tile_m)
    grid_m = m_pad // tile_m

    patches = _phase_patches(x)                     # (4, M, kdim) bf16
    if m_pad != M:
        patches = jnp.pad(patches, ((0, 0), (0, m_pad - M), (0, 0)))
    wmat = _phase_weights(w, coutp)                 # (4, kdim, coutp) bf16

    # Weights / per-channel vectors use index_maps that ignore the M axis so
    # they stay VMEM-resident across M tiles.
    p_spec = pl.BlockSpec((None, tile_m, kdim), lambda f, m: (f, m, 0))
    w_spec = pl.BlockSpec((None, kdim, coutp), lambda f, m: (f, 0, 0))
    y_spec = pl.BlockSpec((None, tile_m, coutp), lambda f, m: (f, m, 0))

    if apply_bn:
        s_spec = pl.BlockSpec((None, 1, 2, coutp), lambda f, m: (f, m, 0, 0))
        y, stats = pl.pallas_call(
            _mm_stats_kernel,
            grid=(4, grid_m),
            in_specs=[p_spec, w_spec],
            out_specs=[y_spec, s_spec],
            out_shape=[jax.ShapeDtypeStruct((4, m_pad, coutp), jnp.float32),
                       jax.ShapeDtypeStruct((4, grid_m, 2, coutp), jnp.float32)],
            compiler_params=_cparams(2),
        )(patches, wmat)

        # Cross-tile BatchNorm reduction (tiny; plain JAX).  Divide by the true
        # element count so the zero padding rows do not bias the statistics.
        count = 4.0 * M                             # == N * OH * OW
        ssum = jnp.sum(stats[:, :, 0, :Cout], axis=(0, 1))
        ssq = jnp.sum(stats[:, :, 1, :Cout], axis=(0, 1))
        mean = ssum / count
        var = ssq / count - mean * mean
        inv = lax.rsqrt(var + BN_EPS)
        scale = gamma * inv
        shift = beta - mean * scale
        scale = jnp.pad(scale, (0, coutp - Cout)).reshape(1, coutp)
        shift = jnp.pad(shift, (0, coutp - Cout)).reshape(1, coutp)

        rows = 4 * m_pad
        e_spec = pl.BlockSpec((tile_m, coutp), lambda m: (m, 0))
        v_spec = pl.BlockSpec((1, coutp), lambda m: (0, 0))
        out = pl.pallas_call(
            _scale_shift_relu_kernel,
            grid=(rows // tile_m,),
            in_specs=[e_spec, v_spec, v_spec],
            out_specs=e_spec,
            out_shape=jax.ShapeDtypeStruct((rows, coutp), jnp.float32),
            compiler_params=_cparams(1),
        )(y.reshape(rows, coutp), scale, shift)
        out = out.reshape(4, m_pad, coutp)
    else:
        bias = jnp.pad(b, (0, coutp - Cout)).reshape(1, coutp)
        b_spec = pl.BlockSpec((1, coutp), lambda f, m: (0, 0))
        out = pl.pallas_call(
            _mm_bias_tanh_kernel,
            grid=(4, grid_m),
            in_specs=[p_spec, w_spec, b_spec],
            out_specs=y_spec,
            out_shape=jax.ShapeDtypeStruct((4, m_pad, coutp), jnp.float32),
            compiler_params=_cparams(2),
        )(patches, wmat, bias)

    # Drop row / lane padding and interleave the 4 phases back to (N, 2H, 2W, C).
    out = out[:, :M, :Cout].reshape(2, 2, N, H, W, Cout)
    out = jnp.transpose(out, (2, 3, 0, 4, 1, 5)).reshape(N, 2 * H, 2 * W, Cout)
    return out


def _first_block(z_nhwc, w, b, gamma, beta):
    """Layer 1: ConvTranspose2d(z_dim -> C, K=4, s=1, p=0) on a 1x1 input is a
    plain per-pixel matmul with M = 16*N rows; kept in XLA since Pallas
    per-grid-step overhead would dominate at this size."""
    N = z_nhwc.shape[0]
    z2 = z_nhwc.reshape(N, -1)                              # (N, z_dim)
    y = jnp.einsum('nc,cdhw->nhwd', z2, w) + b              # (N, 4, 4, Cout)
    mean = jnp.mean(y, axis=(0, 1, 2), keepdims=True)
    var = jnp.mean(jnp.square(y - mean), axis=(0, 1, 2), keepdims=True)
    y = (y - mean) * lax.rsqrt(var + BN_EPS) * gamma + beta
    return jnp.maximum(y, 0.0)


# ------------------------------ Generator API -------------------------------

def init_generator_params(key, z_dim, img_channels, g_channels):
    """Deterministic synthetic parameters matching Generator.__init__ shapes."""
    specs = [
        (z_dim,           g_channels * 16, 1, 0, True),
        (g_channels * 16, g_channels * 8,  2, 1, True),
        (g_channels * 8,  g_channels * 4,  2, 1, True),
        (g_channels * 4,  g_channels * 2,  2, 1, True),
        (g_channels * 2,  img_channels,    2, 1, False),
    ]
    params = []
    for cin, cout, s, p, bn in specs:
        key, kw, kb, kg, kbe = jax.random.split(key, 5)
        params.append(dict(
            w=0.02 * jax.random.normal(kw, (cin, cout, 4, 4), jnp.float32),
            b=0.02 * jax.random.normal(kb, (cout,), jnp.float32),
            gamma=1.0 + 0.1 * jax.random.normal(kg, (cout,), jnp.float32),
            beta=0.1 * jax.random.normal(kbe, (cout,), jnp.float32),
            stride=s, padding=p, bn=bn))
    return params


def generator_forward(z_nchw, params):
    """DCGAN Generator forward. z: (N, z_dim, 1, 1) NCHW -> (N, C, 64, 64)."""
    x = jnp.transpose(z_nchw, (0, 2, 3, 1))      # NCHW -> NHWC
    p0 = params[0]
    x = _first_block(x, p0["w"], p0["b"], p0["gamma"], p0["beta"])
    for p in params[1:]:
        x = _deconv_block_s2(x, p["w"], p["b"], p["gamma"], p["beta"], p["bn"])
    return jnp.transpose(x, (0, 3, 1, 2))        # NHWC -> NCHW

# TODO(synk): BatchNorm running_mean/running_var buffer updates (training
#             bookkeeping) are not modeled; forward uses batch statistics like
#             PyTorch train mode.


def _reference_forward(z_nchw, params):
    """Pure-JAX reference (XLA conv_general_dilated) for a sanity check."""
    x = z_nchw
    for p in params:
        w, s, pad = p["w"], p["stride"], p["padding"]
        K = w.shape[2]
        w_oihw = jnp.transpose(w[:, :, ::-1, ::-1], (1, 0, 2, 3))
        y = lax.conv_general_dilated(
            x, w_oihw, window_strides=(1, 1),
            padding=[(K - 1 - pad, K - 1 - pad)] * 2,
            lhs_dilation=(s, s), rhs_dilation=(1, 1),
            dimension_numbers=("NCHW", "OIHW", "NCHW"))
        y = y + p["b"][None, :, None, None]
        if p["bn"]:
            mean = jnp.mean(y, axis=(0, 2, 3), keepdims=True)
            var = jnp.mean(jnp.square(y - mean), axis=(0, 2, 3), keepdims=True)
            y = (y - mean) / jnp.sqrt(var + BN_EPS)
            y = y * p["gamma"][None, :, None, None] + p["beta"][None, :, None, None]
            y = jnp.maximum(y, 0.0)
        else:
            y = jnp.tanh(y)
        x = y
    return x


if __name__ == "__main__":
    batch, z_dim, img_channels, g_channels = 2, 32, 3, 4
    key = jax.random.PRNGKey(0)
    kz, kp = jax.random.split(key)
    z = jax.random.normal(kz, (batch, z_dim, 1, 1), jnp.float32)
    params = init_generator_params(kp, z_dim, img_channels, g_channels)

    out = jax.block_until_ready(generator_forward(z, params))
    assert out.shape == (batch, img_channels, 64, 64), out.shape

    ref = jax.block_until_ready(_reference_forward(z, params))
    max_err = float(jnp.max(jnp.abs(out - ref)))
    # bf16 MXU inputs (f32 accumulation) leave a small quantization delta vs
    # the all-f32 XLA reference; outputs are tanh-bounded in (-1, 1).
    assert max_err < 5e-2, f"mismatch vs reference: {max_err}"
    print("KERNEL_OK")
</pallas_src>

<mosaic_0001>
module attributes {stable_mosaic.version = 11 : i64} {
  func.func @_mm_stats_kernel(%arg0: i32, %arg1: i32, %arg2: memref<1x32x256xbf16, #tpu.memory_space<vmem>>, %arg3: memref<1x256x128xbf16, #tpu.memory_space<vmem>>, %arg4: memref<1x32x128xf32, #tpu.memory_space<vmem>>, %arg5: memref<1x1x2x128xf32, #tpu.memory_space<vmem>>) attributes {dimension_semantics = [#tpu.dimension_semantics<parallel>, #tpu.dimension_semantics<parallel>], iteration_bounds = array<i64: 4, 1>, scalar_prefetch = 0 : i64, scratch_operands = 0 : i64, tpu.core_type = #tpu.core_type<tc>, window_params = [{transform_indices = @transform_0, window_bounds = array<i64: 1, 32, 256>}, {transform_indices = @transform_1, window_bounds = array<i64: 1, 256, 128>}, {transform_indices = @transform_2, window_bounds = array<i64: 1, 32, 128>}, {transform_indices = @transform_3, window_bounds = array<i64: 1, 1, 2, 128>}]} {
    %c0 = arith.constant 0 : index
    %c0_0 = arith.constant 0 : index
    %c0_1 = arith.constant 0 : index
    %0 = vector.load %arg2[%c0, %c0_0, %c0_1] : memref<1x32x256xbf16, #tpu.memory_space<vmem>>, vector<1x32x256xbf16>
    %1 = vector.shape_cast %0 : vector<1x32x256xbf16> to vector<32x256xbf16>
    %c0_2 = arith.constant 0 : index
    %c0_3 = arith.constant 0 : index
    %c0_4 = arith.constant 0 : index
    %2 = vector.load %arg3[%c0_2, %c0_3, %c0_4] : memref<1x256x128xbf16, #tpu.memory_space<vmem>>, vector<1x256x128xbf16>
    %3 = vector.shape_cast %2 : vector<1x256x128xbf16> to vector<256x128xbf16>
    %cst = arith.constant dense<0.000000e+00> : vector<32x128xf32>
    %4 = tpu.matmul %1, %3, %cst {dimension_numbers = #tpu.dot_dimension_numbers<[1], [0], [0], [1], [0, 0, 1, 1], [], []>} : vector<32x256xbf16>, vector<256x128xbf16>, vector<32x128xf32> -> vector<32x128xf32>
    %c0_5 = arith.constant 0 : index
    %c0_6 = arith.constant 0 : index
    %c0_7 = arith.constant 0 : index
    %5 = vector.load %arg4[%c0_5, %c0_6, %c0_7] : memref<1x32x128xf32, #tpu.memory_space<vmem>>, vector<1x32x128xf32>
    %6 = vector.shape_cast %5 : vector<1x32x128xf32> to vector<32x128xf32>
    %7 = vector.shape_cast %4 : vector<32x128xf32> to vector<1x32x128xf32>
    tpu.vector_store %arg4[%c0_5, %c0_6, %c0_7], %7 {strides = array<i32>} : memref<1x32x128xf32, #tpu.memory_space<vmem>>, vector<1x32x128xf32>,
    %cst_8 = arith.constant dense<0.000000e+00> : vector<128xf32>
    %8 = vector.multi_reduction <add>, %4, %cst_8 [0] : vector<32x128xf32> to vector<128xf32>
    %9 = vector.shape_cast %8 : vector<128xf32> to vector<1x128xf32>
    %10 = arith.mulf %4, %4 : vector<32x128xf32>
    %cst_9 = arith.constant dense<0.000000e+00> : vector<128xf32>
    %11 = vector.multi_reduction <add>, %10, %cst_9 [0] : vector<32x128xf32> to vector<128xf32>
    %12 = vector.shape_cast %11 : vector<128xf32> to vector<1x128xf32>
    %13 = tpu.concatenate %9, %12 in 0 : vector<1x128xf32>, vector<1x128xf32> -> vector<2x128xf32>
    %14 = vector.shape_cast %13 : vector<2x128xf32> to vector<1x2x128xf32>
    %c0_10 = arith.constant 0 : index
    %c0_11 = arith.constant 0 : index
    %c0_12 = arith.constant 0 : index
    %c0_13 = arith.constant 0 : index
    %15 = vector.load %arg5[%c0_10, %c0_11, %c0_12, %c0_13] : memref<1x1x2x128xf32, #tpu.memory_space<vmem>>, vector<1x1x2x128xf32>
    %16 = vector.shape_cast %15 : vector<1x1x2x128xf32> to vector<1x2x128xf32>
    %17 = vector.shape_cast %14 : vector<1x2x128xf32> to vector<1x1x2x128xf32>
    tpu.vector_store %arg5[%c0_10, %c0_11, %c0_12, %c0_13], %17 {strides = array<i32>} : memref<1x1x2x128xf32, #tpu.memory_space<vmem>>, vector<1x1x2x128xf32>,
    return
  }
  func.func @transform_0(%arg0: i32, %arg1: i32) -> (i32, i32, i32) {
    %c0_i32 = arith.constant 0 : i32
    %c0_i32_0 = arith.constant 0 : i32
    return %arg0, %arg1, %c0_i32 : i32, i32, i32
  }
  func.func @transform_1(%arg0: i32, %arg1: i32) -> (i32, i32, i32) {
    %c0_i32 = arith.constant 0 : i32
    %c0_i32_0 = arith.constant 0 : i32
    %c0_i32_1 = arith.constant 0 : i32
    return %arg0, %c0_i32, %c0_i32_0 : i32, i32, i32
  }
  func.func @transform_2(%arg0: i32, %arg1: i32) -> (i32, i32, i32) {
    %c0_i32 = arith.constant 0 : i32
    %c0_i32_0 = arith.constant 0 : i32
    return %arg0, %arg1, %c0_i32 : i32, i32, i32
  }
  func.func @transform_3(%arg0: i32, %arg1: i32) -> (i32, i32, i32, i32) {
    %c0_i32 = arith.constant 0 : i32
    %c0_i32_0 = arith.constant 0 : i32
    %c0_i32_1 = arith.constant 0 : i32
    return %arg0, %arg1, %c0_i32, %c0_i32_0 : i32, i32, i32, i32
  }
}

</mosaic_0001>

<bundles_post_ra>
// kernel: tpu_custom_call.1
= control target key start
LH: loop header
LB: loop body
LE: loop exit
PB: predicated region body
PF: predicated region fallthrough
CT: control target
= control target key end

     0   :  { %s1286_s0 = inlined_call_operand.hbm [shape: bf16[4,32,256], index: 0, kind: input, shape index: {}]   ;;  %s1287_s1 = inlined_call_operand.hbm [shape: bf16[4,256,128], index: 1, kind: input, shape index: {}]   ;;  %s1288_s2 = inlined_call_operand.hbm [shape: f32[4,32,128], index: 2, kind: output, shape index: {0}]   ;;  %s1289_s3 = inlined_call_operand.hbm [shape: f32[4,1,2,128], index: 3, kind: output, shape index: {1}]  }
   0x1   :  { %1291 = sst [smem:[#allocation15_spill]] %s1286_s0 }
   0x2   :  { %9 = vsyncpa [#allocation3], 0 }
   0x3   :  { %11 = vsyncpa [#allocation3 + $0x1], 0 }
   0x4   :  { %12 = vsyncpa [#allocation6], 0 }
   0x5   :  { %14 = vsyncpa [#allocation6 + $0x1], 0 }
   0x6   :  { %15 = vsyncpa [#allocation4], 0 }
   0x7   :  { %17 = vsyncpa [#allocation4 + $0x1], 0 }
   0x8   :  { %18 = vsyncpa [#allocation9], 0 }
   0x9   :  { %20 = vsyncpa [#allocation9 + $0x1], 0  ;;  %s1093_s12 = smov 0   ;;  %s1095_s13 = smov 0  }
   0xa   :  { %s1097_s14 = smov 0   ;;  %s1099_s15 = smov 0  }
   0xb   :  { %s1101_s16 = smov 0   ;;  %s1103_s17 = smov 0  }
   0xc LB: > { %s668_s18 = sadd.s32 4294967295, %s1065_s17   ;;  %s669_s19 = sadd.s32 4294967294, %s1065_s17   ;;  %s1065_s17 = sphi %s1103_s17, %s26_s17   ;;  %s1061_s16 = sphi %s1101_s16, %s1304_s16   ;;  %s1057_s15 = sphi %s1099_s15, %s1303_s15   ;;  %s1053_s14 = sphi %s1097_s14, %s1302_s14   ;;  %s1049_s13 = sphi %s1095_s13, %s1301_s13   ;;  %s1045_s12 = sphi %s1093_s12, %s1300_s12  }
   0xd   : > { %s38_s20 = sadd.s32 1, %s1061_s16  ;;  %s47_s21 = sadd.s32 1, %s1053_s14 }
   0xe   : > { %p40_p0 = scmp.ge.s32.totalorder %s38_s20, 4  ;;  %p54_p1 = scmp.ne.s32.totalorder %s1053_s14, %s1049_s13 }
   0xf   : > { %p55_p2 = scmp.eq.s32.totalorder %s1065_s17, 0  ;;  %p60_p3 = scmp.ne.s32.totalorder %s1049_s13, %s1045_s12 }
  0x10   : > { %s1306_s20 = smov (%p40_p0, %s38_s20), 0  ;;  %p61_p5 = scmp.eq.s32.totalorder %s668_s18, 0 }
  0x11   : > { %1292 = sst [smem:[#allocation14_spill]] %s1306_s20  ;;  %p1134_p4 = por %p55_p2, %p54_p1 }
  0x12   : > { %s42_s23 = ssub.s32 %s1061_s16, %s1306_s20  ;;  %p112_p6 = scmp.eq.s32.totalorder %s668_s18, 3 }
  0x13   : > { %p45_p7 = scmp.eq.s32.totalorder %s42_s23, 0  ;;  %p1140_p8 = por %p61_p5, %p60_p3 }
  0x14   : > { %p1144_p9 = por %p112_p6, %p54_p1  ;;  %p118_p10 = scmp.eq.s32.totalorder %s669_s19, 3 }
  0x15   : > { %s1149_s26 = scalar_select %p45_p7, %s1053_s14, %s47_s21  }
  0x16   : > { %p1151_p11 = por %p118_p10, %p60_p3  ;;  %p831_p12 = scmp.lt.s32.totalorder %s1065_s17, 4 }
  0x17   : > { %s1157_s28 = sand.u32 1, %s1053_s14   ;;  %s770_s30 = sshll.u32 %s1061_s16, 5 }
  0x18   : > { %s672_s29 = sshll.u32 %s1157_s28, 5  ;;  %s1297_s0 = sld [smem:[#allocation15_spill]] }
  0x19   : > { %s170_s7 = scalar_lea.vmem [#allocation2], %s672_s29  ;;  %p1166_p13 = pnand %p831_p12, %p1134_p4 }
  0x1a   : > { %s181_s8 = sshll.u32 %s170_s7, 4  ;;  %p678_p0 = scmp.ge.s32.totalorder %s1065_s17, 1  ;;  %s182_s8 = int_to_ptr.vmem [resolvable:$true] %s181_s8 }
  0x1b   : > { %s167_s11 = scalar_lea.sflag [#allocation3], %s1157_s28  ;;  %s1067_s18 = smov 128  }
  0x1c   : > { %s1068_s19 = smov 8   ;;  %p211_p1 = scmp.lt.s32.totalorder %s1065_s17, 5 }
  0x1d   : > { %s675_s21 = sshll.u32 %s1157_s28, 7  ;;  %s771_s23 = sshll.u32 %s1061_s16, 7 }
  0x1e   : > { %s178_s6 = scalar_lea.hbm %s1297_s0, %s770_s30  ;;  %p212_p2 = pnand %p678_p0, %p211_p1 }
  0x1f   : > { %s179_s9 = sshll.u32 %s178_s6, 4  ;;  %s200_s22 = scalar_lea.hbm %s1287_s1, %s771_s23  ;;  %s180_s9 = int_to_ptr.hbm [resolvable:$true] %s179_s9 }
  0x20   : > { %820 = dma.hbm_to_vmem [thread:$0]  (!%p1166_p13), %s180_s9, 512, %s182_s8, %s167_s11, %s1067_s18, %s1067_s18, %s1068_s19  }
  0x21   : > { %s195_s4 = scalar_lea.vmem [#allocation5], %s675_s21  ;;  %s201_s6 = sshll.u32 %s200_s22, 4  ;;  %s202_s6 = int_to_ptr.hbm [resolvable:$true] %s201_s6 }
  0x22   : > { %s203_s5 = sshll.u32 %s195_s4, 4  ;;  %s192_s7 = scalar_lea.sflag [#allocation6], %s1157_s28  ;;  %s204_s5 = int_to_ptr.vmem [resolvable:$true] %s203_s5 }
  0x23   : > { %s1069_s0 = smov 64   ;;  %s1070_s20 = smov 4  }
  0x24   : > { %823 = dma.hbm_to_vmem [thread:$0]  (!%p1166_p13), %s202_s6, 2048, %s204_s5, %s192_s7, %s1069_s0, %s1069_s0, %s1070_s20  }
  0x25   : > { %215 = sbr.rel (%p212_p2) target bundleno = 241 (0xf1), region = 28  ;;  %s1184_s8 = sand.u32 (!%p212_p2), 1, %s1049_s13  }
  0x26   : > { %s679_s9 = sshll.u32 (!%p212_p2), %s1184_s8, 5  ;;  %s218_s11 = scalar_lea.sflag (!%p212_p2), [#allocation3], %s1184_s8 }
  0x27   : > { %s1190_s18 = scalar_lea.vmem (!%p212_p2), [#allocation2], %s679_s9 }
  0x2a   : > { %1028 = dma.done.wait (%p1140_p8), %s218_s11, 512  }
  0x2b   : > { %1030 = vsyncadd (%p1140_p8), %s218_s11, 4294966784  ;;  %s680_s0 = sshll.u32 %s1184_s8, 7  ;;  %s228_s20 = scalar_lea.sflag [#allocation6], %s1184_s8 }
  0x2c   : > { %s1198_s28 = scalar_lea.vmem [#allocation5], %s680_s0 }
  0x2d   : > { %1032 = dma.done.wait (%p1140_p8), %s228_s20, 2048  }
  0x2e   : > { %1034 = vsyncadd (%p1140_p8), %s228_s20, 4294965248  ;;  %v783_v0 = vld [vmem:[%s1198_s28 + $0x38] sm:$0xff]  ;;  %v782_v2 = vld [vmem:[%s1198_s28 + $0x30] sm:$0xff]  ;;  %s257_s24 = scalar_lea.vmem [#allocation7], %s679_s9  ;;  %s792_s10 = sshll.u32 %s1057_s15, 5 }
  0x2f   : > { %v791_v1 = vld [vmem:[%s1198_s28 + $0x78] sm:$0xff]  ;;  %419 = vmatpush.bf16.msra.mxu0 %v783_v0  ;;  %793 = vmatpush.bf16.msra.mxu2 %v783_v0  ;;  %v790_v3 = vld [vmem:[%s1198_s28 + $0x70] sm:$0xff]  ;;  %v781_v4 = vld [vmem:[%s1198_s28 + $0x28] sm:$0xff]  ;;  %s505_s23 = scalar_lea.hbm %s1288_s2, %s792_s10  ;;  %s506_s29 = sshll.u32 %s257_s24, 4  ;;  %s1234_s29 = int_to_ptr.vmem [resolvable:$true] %s506_s29 }
  0x30   : > { %438 = vmatpush.bf16.msra.mxu1 %v791_v1  ;;  %801 = vmatpush.bf16.msra.mxu3 %v791_v1  ;;  %v789_v5 = vld [vmem:[%s1198_s28 + $0x68] sm:$0xff]  ;;  %v780_v6 = vld [vmem:[%s1198_s28 + $0x20] sm:$0xff]  ;;  %v779_v8 = vld [vmem:[%s1198_s28 + $0x18] sm:$0xff]  ;;  %s508_s30 = sshll.u32 %s505_s23, 4  ;;  %s487_s22 = scalar_lea.sflag [#allocation4], %s1184_s8  ;;  %s509_s30 = int_to_ptr.hbm [resolvable:$true] %s508_s30 }
  0x31   : > { %v788_v7 = vld [vmem:[%s1198_s28 + $0x60] sm:$0xff]  ;;  %v787_v9 = vld [vmem:[%s1198_s28 + $0x58] sm:$0xff]  ;;  %v778_v10 = vld [vmem:[%s1198_s28 + $0x10] sm:$0xff]  ;;  %s961_s4 = sshra.s32 %s509_s30, 4  ;;  %s967_s9 = scalar_lea.hbm %s1288_s2, 128  ;;  %s962_s4 = int_to_ptr.hbm [resolvable:$true] %s961_s4 }
  0x32   : > { %v786_v11 = vld [vmem:[%s1198_s28 + $0x50] sm:$0xff]  ;;  %v777_v12 = vld [vmem:[%s1198_s28 + $0x8] sm:$0xff]  ;;  %v776_v14 = vld [vmem:[%s1198_s28] sm:$0xff]  ;;  %s963_s5 = scalar_lea.hbm %s962_s4, 32  ;;  %p968_p6 = scmp.lt.s32.totalorder %s962_s4, %s1288_s2 }
  0x33   : > { %420 = vmatpush.bf16.msra.mxu0 %v782_v2  ;;  %794 = vmatpush.bf16.msra.mxu2 %v782_v2  ;;  %v785_v13 = vld [vmem:[%s1198_s28 + $0x48] sm:$0xff]  ;;  %v784_v15 = vld [vmem:[%s1198_s28 + $0x40] sm:$0xff]  ;;  %v693_v18 = vld [vmem:[%s1190_s18 + $0x10] sm:$0xf]  ;;  %p964_p3 = scmp.ne.s32.totalorder %s962_s4, %s963_s5  ;;  %p969_p7 = scmp.lt.s32.totalorder %s967_s9, %s963_s5 }
  0x34   : > { %439 = vmatpush.bf16.msra.mxu1 %v790_v3  ;;  %802 = vmatpush.bf16.msra.mxu3 %v790_v3  ;;  %v685_v16 = vld [vmem:[%s1190_s18] sm:$0xf]  ;;  %v773_v17 = vld [vmem:[%s1190_s18 + $0x4] sm:$0xf0]  ;;  %v775_v19 = vld [vmem:[%s1190_s18 + $0x14] sm:$0xf0] }
  0x35   : > { %v772_v20 = vld [vmem:[%s1190_s18 + $0x4] sm:$0xf]  ;;  %v687_v21 = vld [vmem:[%s1190_s18 + $0x8] sm:$0xf0]  ;;  %v774_v22 = vld [vmem:[%s1190_s18 + $0x14] sm:$0xf]  ;;  %v686_v24 = vor.u32 %v773_v17, %v685_v16  ;;  %v694_v25 = vor.u32 %v775_v19, %v693_v18  ;;  %p965_p4 = pnand %p964_p3, %p1144_p9  ;;  %p970_p8 = por %p969_p7, %p968_p6 }
  0x36   : > { %v695_v23 = vld [vmem:[%s1190_s18 + $0x18] sm:$0xf0]  ;;  %v690_v26 = vor.u32 %v772_v20, %v687_v21 }
  0x37   : > { %421 = vmatpush.bf16.msra.mxu0 %v781_v4  ;;  %795 = vmatpush.bf16.msra.mxu2 %v781_v4  ;;  %v698_v27 = vor.u32 %v774_v22, %v695_v23  ;;  %p966_p5 = pneg %p965_p4 }
  0x38   : > { %440 = vmatpush.bf16.msra.mxu1 %v789_v5  ;;  %803 = vmatpush.bf16.msra.mxu3 %v789_v5 }
  0x39   : > { %p971_p10 = pnand %p970_p8, %p966_p5 }
  0x3b   : > { %422 = vmatpush.bf16.msra.mxu0 %v780_v6  ;;  %796 = vmatpush.bf16.msra.mxu2 %v780_v6 }
  0x3c   : > { %441 = vmatpush.bf16.msra.mxu1 %v788_v7  ;;  %804 = vmatpush.bf16.msra.mxu3 %v788_v7 }
  0x3f   : > { %423 = vmatpush.bf16.msra.mxu0 %v779_v8  ;;  %797 = vmatpush.bf16.msra.mxu2 %v779_v8 }
  0x40   : > { %442 = vmatpush.bf16.msra.mxu1 %v787_v9  ;;  %805 = vmatpush.bf16.msra.mxu3 %v787_v9 }
  0x43   : > { %424 = vmatpush.bf16.msra.mxu0 %v778_v10  ;;  %798 = vmatpush.bf16.msra.mxu2 %v778_v10 }
  0x44   : > { %443 = vmatpush.bf16.msra.mxu1 %v786_v11  ;;  %806 = vmatpush.bf16.msra.mxu3 %v786_v11 }
  0x47   : > { %425 = vmatpush.bf16.msra.mxu0 %v777_v12  ;;  %799 = vmatpush.bf16.msra.mxu2 %v777_v12 }
  0x48   : > { %444 = vmatpush.bf16.msra.mxu1 %v785_v13  ;;  %807 = vmatpush.bf16.msra.mxu3 %v785_v13 }
  0x4b   : > { %426 = vmatpush.bf16.msra.mxu0 %v776_v14  ;;  %800 = vmatpush.bf16.msra.mxu2 %v776_v14 }
  0x4c   : > { %445 = vmatpush.bf16.msra.mxu1 %v784_v15  ;;  %808 = vmatpush.bf16.msra.mxu3 %v784_v15 }
  0x4e   : > { %427 = vmatmul.bf16.vlgmr.msra.gmra.mxu0 %v686_v24  ;;  %432 = vmatmul.bf16.vlgmr.msra.gmra.mxu2 %v694_v25 }
  0x4f   : > { %446 = vmatmul.bf16.vlgmr.msra.gmra.mxu1 %v690_v26  ;;  %451 = vmatmul.bf16.vlgmr.msra.gmra.mxu3 %v698_v27 }
  0xcb   : > { %v428_v28 = vpop.f32.mrf.mxu0 }
  0xcc   : > { %v447_v29 = vpop.f32.mrf.mxu1 }
  0xcd   : > { %v448_v30 = vadd.f32 %v447_v29, %v428_v28 }
  0xcf   : > { %457 = vst [vmem:[%s257_s24] sm:$0xff] %v448_v30  ;;  %v470_v37 = vmul.f32 %v448_v30, %v448_v30 }
  0xd1   : > { %v433_v31 = vpop.f32.mrf.mxu2 }
  0xd2   : > { %v452_v32 = vpop.f32.mrf.mxu3 }
  0xd3   : > { %v453_v33 = vadd.f32 %v452_v32, %v433_v31  ;;  %v430_v34 = vpop.f32.mrf.mxu0 }
  0xd4   : > { %v449_v35 = vpop.f32.mrf.mxu1 }
  0xd5   : > { %459 = vst [vmem:[%s257_s24 + $0x10] sm:$0xff] %v453_v33  ;;  %v450_v36 = vadd.f32 %v449_v35, %v430_v34  ;;  %v472_v43 = vmul.f32 %v453_v33, %v453_v33 }
  0xd7   : > { %458 = vst [vmem:[%s257_s24 + $0x8] sm:$0xff] %v450_v36  ;;  %v461_v38 = vadd.f32 %v450_v36, %v448_v30  ;;  %v471_v39 = vmul.f32 %v450_v36, %v450_v36 }
  0xd9   : > { %v474_v40 = vadd.f32 %v471_v39, %v470_v37  ;;  %v435_v41 = vpop.f32.mrf.mxu2  ;;  %v462_v45 = vadd.f32 %v461_v38, %v453_v33 }
  0xda   : > { %v454_v42 = vpop.f32.mrf.mxu3 }
  0xdb   : > { %v455_v44 = vadd.f32 %v454_v42, %v435_v41  ;;  %v475_v48 = vadd.f32 %v474_v40, %v472_v43 }
  0xdd   : > { %460 = vst [vmem:[%s257_s24 + $0x18] sm:$0xff] %v455_v44  ;;  %v463_v46 = vadd.f32 %v462_v45, %v455_v44  ;;  %v473_v47 = vmul.f32 %v455_v44, %v455_v44 }
  0xde   : > { %974 = shalt.err (!%p971_p10)
}
  0xdf   : > { %s1071_s0 = smov 128   ;;  %s1072_s20 = smov 8   ;;  %v464_v49 = vrot.slane %v463_v46, 4  ;;  %v476_v50 = vadd.f32 %v475_v48, %v473_v47  ;;  %vm483_vm0 = vcmask 1040384  }
  0xe0   : > { %813 = dma.vmem_to_hbm [thread:$0]  (%p1144_p9), %s1234_s29, 512, %s509_s30, %s487_s22, %s1071_s0, %s1071_s0, %s1072_s20  }
  0xe1   : > { %v465_v51 = vadd.f32 %v464_v49, %v463_v46  ;;  %v477_v52 = vrot.slane %v476_v50, 4  ;;  %s682_s28 = sshll.u32 %s1184_s8, 1  ;;  %s767_s24 = sshll.u32 %s1057_s15, 1 }
  0xe2   : > { %s522_s21 = scalar_lea.hbm %s1289_s3, %s767_s24  ;;  %s264_s23 = scalar_lea.vmem [#allocation8], %s682_s28 }
  0xe3   : > { %v466_v53 = vrot.slane %v465_v51, 2  ;;  %v478_v54 = vadd.f32 %v477_v52, %v476_v50  ;;  %s524_s29 = sshll.u32 %s264_s23, 4  ;;  %s526_s30 = sshll.u32 %s522_s21, 4  ;;  %s525_s29 = int_to_ptr.vmem [resolvable:$true] %s524_s29  ;;  %s527_s30 = int_to_ptr.hbm [resolvable:$true] %s526_s30 }
  0xe4   : > { %s492_s15 = scalar_lea.sflag [#allocation9], %s1184_s8  ;;  %s989_s22 = sshra.s32 %s527_s30, 4  ;;  %s990_s22 = int_to_ptr.hbm [resolvable:$true] %s989_s22 }
  0xe5   : > { %v467_v55 = vadd.f32 %v466_v53, %v465_v51  ;;  %v479_v56 = vrot.slane %v478_v54, 2  ;;  %s991_s4 = scalar_lea.hbm %s990_s22, 2  ;;  %s995_s7 = scalar_lea.hbm %s1289_s3, 8 }
  0xe6   : > { %p992_p12 = scmp.ne.s32.totalorder %s990_s22, %s991_s4  ;;  %p996_p1 = scmp.lt.s32.totalorder %s990_s22, %s1289_s3 }
  0xe7   : > { %v468_v57 = vrot.slane %v467_v55, 1  ;;  %v480_v58 = vadd.f32 %v479_v56, %v478_v54  ;;  %p997_p2 = scmp.lt.s32.totalorder %s995_s7, %s991_s4 }
  0xe8   : > { %p993_p13 = pnand %p992_p12, %p1144_p9 }
  0xe9   : > { %v481_v59 = vrot.slane %v480_v58, 1  ;;  %v469_v60 = vadd.f32 %v468_v57, %v467_v55  ;;  %p998_p3 = por %p997_p2, %p996_p1 }
  0xea   : > { %p994_p0 = pneg %p993_p13 }
  0xeb   : > { %v482_v61 = vadd.f32 %v481_v59, %v480_v58 }
  0xec   : > { %p999_p4 = pnand %p998_p3, %p994_p0 }
  0xed   : > { %v484_v62 = vsel %vm483_vm0, %v469_v60, %v482_v61 }
  0xee   : > { %485 = vst [vmem:[%s264_s23] sm:$0x3] %v484_v62 }
  0xef   : > { %1002 = shalt.err (!%p999_p4)
}
  0xf0   : > { %814 = dma.vmem_to_hbm [thread:$0]  (%p1144_p9), %s525_s29, 32, %s527_s30, %s492_s15  }
  0xf1 PF: > { %p832_p5 = scmp.ge.s32.totalorder %s1065_s17, 2  ;;  %s538_s8 = sand.u32 1, %s1045_s12  }
  0xf2   : > { %s539_s18 = scalar_lea.sflag [#allocation4], %s538_s8 }
  0xf3   : > { %p825_p6 = pnand %p832_p5, %p1151_p11 }
  0xf5   : > { %p826_p7 = pneg %p825_p6 }
  0xf7   : > { %1036 = dma.done.wait (%p826_p7), %s539_s18, 512  }
  0xf8   : > { %1038 = vsyncadd (%p826_p7), %s539_s18, 4294966784  ;;  %s549_s0 = scalar_lea.sflag [#allocation9], %s538_s8 }
  0xf9   : > { %1040 = dma.done.wait (%p826_p7), %s549_s0, 32  }
  0xfa   : > { %1042 = vsyncadd (%p826_p7), %s549_s0, 4294967264  ;;  %s26_s17 = sadd.s32 1, %s1065_s17   ;;  %s1299_s25 = sld [smem:[#allocation14_spill]] }
  0xfb   : > { %p23_p8 = scmp.ge.s32.totalorder %s26_s17, 6   ;;  %s1300_s12 = smov %s1049_s13 }
  0xfc   : > { %s1301_s13 = smov %s1053_s14  ;;  %s1302_s14 = smov %s1149_s26 }
  0xfd   : > { %s1303_s15 = smov %s1061_s16  ;;  %25 = sbr.rel (!%p23_p8) target bundleno = 12 (0xc), region = 103 }
 0x100   : > { %s1304_s16 = smov %s1299_s25 }
 0x102   :  { %555 = vsyncpa [#allocation3], 1 }
 0x103   :  { %557 = vsyncpa [#allocation3 + $0x1], 1 }
 0x104   :  { %558 = vsyncpa [#allocation6], 1 }
 0x105   :  { %560 = vsyncpa [#allocation6 + $0x1], 1 }
 0x106   :  { %561 = vsyncpa [#allocation4], 1 }
 0x107   :  { %563 = vsyncpa [#allocation4 + $0x1], 1 }
 0x108   :  { %564 = vsyncpa [#allocation9], 1 }
 0x109   :  { %566 = vsyncpa [#allocation9 + $0x1], 1 }

</bundles_post_ra>
